<compile_context>
chip_gen: v5e
topology: v5e:2x2
jax: 0.10.0
libtpu: 0.0.40
codegen_flags: <defaults>
</compile_context>

<pallas_src>
import math

import jax
import jax.numpy as jnp
from jax.experimental import pallas as pl
from jax.experimental.pallas import tpu as pltpu


def _round_up(v, m):
    return (v + m - 1) // m * m


# ---------------------------------------------------------------------------
# Kernels
# ---------------------------------------------------------------------------
def _gcn_kernel(x_ref, adj_ref, w_ref, o_ref, support_ref):
    # x_ref:   (Np, Fin)      adj_ref: (TM, Np)       w_ref: (Fin, Fout_p)
    # o_ref:   (TM, Fout_p)   support_ref: (Np, Fout_p) VMEM scratch
    @pl.when(pl.program_id(1) == 0)
    def _():
        # Compute support = X @ W once per batch; reused by every row tile.
        support_ref[...] = jnp.dot(
            x_ref[...], w_ref[...],
            preferred_element_type=jnp.float32).astype(support_ref.dtype)

    out = jnp.dot(adj_ref[...], support_ref[...],
                  preferred_element_type=jnp.float32)
    o_ref[...] = out.astype(o_ref.dtype)


def _gcn_kernel_bias(x_ref, adj_ref, w_ref, b_ref, o_ref, support_ref):
    @pl.when(pl.program_id(1) == 0)
    def _():
        support_ref[...] = jnp.dot(
            x_ref[...], w_ref[...],
            preferred_element_type=jnp.float32).astype(support_ref.dtype)

    out = jnp.dot(adj_ref[...], support_ref[...],
                  preferred_element_type=jnp.float32)
    out = out + b_ref[...]            # (1, Fout_p) f32 bias, broadcast over rows
    o_ref[...] = out.astype(o_ref.dtype)


# ---------------------------------------------------------------------------
# Tile planning (VMEM budget conservative enough for v7x's 64 MiB physical)
# ---------------------------------------------------------------------------
_VMEM_BUDGET = 40 * 1024 * 1024


def _plan_tiles(N, Fin, Fout_p, in_size, out_size, tm_target):
    n8 = _round_up(max(N, 1), 8)
    tm = min(_round_up(max(tm_target, 8), 8), n8)

    def footprint(tm_):
        npad = _round_up(N, tm_)
        return (2 * tm_ * npad * in_size        # adj double buffer
                + 2 * npad * Fin * in_size      # x double buffer
                + 2 * Fin * Fout_p * in_size    # weight buffers
                + 2 * tm_ * Fout_p * out_size   # output double buffer
                + npad * Fout_p * in_size       # support scratch
                + 2 * Fout_p * 4)               # bias

    while tm > 16 and footprint(tm) > _VMEM_BUDGET:
        tm = _round_up(tm // 2, 8)
    return tm, footprint(tm)


# ---------------------------------------------------------------------------
# Wrapper
# ---------------------------------------------------------------------------
def graph_convolution(x, adj, weight, bias=None, *,
                      compute_dtype=jnp.bfloat16, tm=256):
    """Pallas GCN forward.

    x:[B,N,Fin], adj:[B,N,N], weight:[Fin,Fout], bias:[1,1,Fout] or None.
    Returns [B,N,Fout] in x.dtype.
    """
    B, N, Fin = x.shape
    assert adj.shape == (B, N, N)
    assert weight.shape[0] == Fin
    Fout = weight.shape[1]
    out_dtype = x.dtype

    cdt = jnp.dtype(compute_dtype)
    in_size = cdt.itemsize
    out_size = jnp.dtype(out_dtype).itemsize

    Fout_p = _round_up(Fout, 128)                       # lane-dense output
    TM, fp_bytes = _plan_tiles(N, Fin, Fout_p, in_size, out_size, tm)
    Np = _round_up(N, TM)

    # Pad + cast at the wrapper boundary (bf16 halves the dominant adj traffic).
    xp = jnp.pad(x.astype(cdt), ((0, 0), (0, Np - N), (0, 0)))
    adjp = jnp.pad(adj.astype(cdt), ((0, 0), (0, Np - N), (0, Np - N)))
    wp = jnp.pad(weight.astype(cdt), ((0, 0), (0, Fout_p - Fout)))

    grid = (B, Np // TM)

    x_spec = pl.BlockSpec((None, Np, Fin), lambda b, m: (b, 0, 0))
    adj_spec = pl.BlockSpec((None, TM, Np), lambda b, m: (b, m, 0))
    w_spec = pl.BlockSpec((Fin, Fout_p), lambda b, m: (0, 0))
    o_spec = pl.BlockSpec((None, TM, Fout_p), lambda b, m: (b, m, 0))

    scratch = [pltpu.VMEM((Np, Fout_p), cdt)]           # per-batch support = X @ W
    out_shape = jax.ShapeDtypeStruct((B, Np, Fout_p), out_dtype)

    vmem_limit = int(min(max(32 * 1024 * 1024,
                             fp_bytes + fp_bytes // 4 + (2 << 20)),
                         56 * 1024 * 1024))
    cparams = pltpu.CompilerParams(
        dimension_semantics=("parallel", "arbitrary"),
        vmem_limit_bytes=vmem_limit,
    )

    if bias is None:
        out_p = pl.pallas_call(
            _gcn_kernel,
            out_shape=out_shape,
            grid_spec=pltpu.PrefetchScalarGridSpec(
                num_scalar_prefetch=0,
                grid=grid,
                in_specs=[x_spec, adj_spec, w_spec],
                out_specs=o_spec,
                scratch_shapes=scratch,
            ),
            compiler_params=cparams,
        )(xp, adjp, wp)
    else:
        bp = jnp.pad(bias.reshape(1, Fout).astype(jnp.float32),
                     ((0, 0), (0, Fout_p - Fout)))
        b_spec = pl.BlockSpec((1, Fout_p), lambda b, m: (0, 0))
        out_p = pl.pallas_call(
            _gcn_kernel_bias,
            out_shape=out_shape,
            grid_spec=pltpu.PrefetchScalarGridSpec(
                num_scalar_prefetch=0,
                grid=grid,
                in_specs=[x_spec, adj_spec, w_spec, b_spec],
                out_specs=o_spec,
                scratch_shapes=scratch,
            ),
            compiler_params=cparams,
        )(xp, adjp, wp, bp)

    return out_p[:, :N, :Fout]


def init_params(key, in_features, out_features, bias=False, dtype=jnp.float32):
    """Re-implementation of reset_parameters(): U(-stdv, stdv), stdv=1/sqrt(out)."""
    stdv = 1.0 / math.sqrt(out_features)
    kw, kb = jax.random.split(key)
    weight = jax.random.uniform(kw, (in_features, out_features),
                                minval=-stdv, maxval=stdv, dtype=dtype)
    if bias:
        b = jax.random.uniform(kb, (1, 1, out_features),
                               minval=-stdv, maxval=stdv, dtype=dtype)
    else:
        b = None
    return weight, b


if __name__ == "__main__":
    key = jax.random.PRNGKey(0)
    k1, k2, k3, k4, k5 = jax.random.split(key, 5)

    # Small shapes consistent with the module: batch=2, nodes=16, Fin=8, Fout=32.
    B, N, Fin, Fout = 2, 16, 8, 32
    x = jax.random.normal(k1, (B, N, Fin), dtype=jnp.float32)
    adj = jax.random.uniform(k2, (B, N, N), dtype=jnp.float32)

    # 1) f32 compute path, no bias (module default config): tight tolerance.
    weight, _ = init_params(k3, Fin, Fout, bias=False)
    out = jax.block_until_ready(
        graph_convolution(x, adj, weight, None, compute_dtype=jnp.float32))
    ref = jnp.matmul(adj, jnp.matmul(x, weight))
    assert out.shape == (B, N, Fout)
    assert jnp.allclose(out, ref, atol=1e-4, rtol=1e-4), "f32 path mismatch"

    # 2) default bf16 MXU path, with bias: looser tolerance (bf16 inputs).
    weight_b, bias_b = init_params(k3, Fin, Fout, bias=True)
    out_b = jax.block_until_ready(graph_convolution(x, adj, weight_b, bias_b))
    ref_b = jnp.matmul(adj, jnp.matmul(x, weight_b)) + bias_b
    assert out_b.shape == (B, N, Fout)
    assert jnp.allclose(out_b, ref_b, atol=5e-2, rtol=5e-2), "bf16 path mismatch"

    # 3) padding + multi-row-tile path (unaligned N/Fout; small tm forces 3 tiles).
    B2, N2, Fin2, Fout2 = 2, 40, 12, 20
    x2 = jax.random.normal(k4, (B2, N2, Fin2), dtype=jnp.float32)
    adj2 = jax.random.uniform(k5, (B2, N2, N2), dtype=jnp.float32)
    w2, b2 = init_params(k3, Fin2, Fout2, bias=True)
    out2 = jax.block_until_ready(
        graph_convolution(x2, adj2, w2, b2, compute_dtype=jnp.float32, tm=16))
    ref2 = jnp.matmul(adj2, jnp.matmul(x2, w2)) + b2
    assert out2.shape == (B2, N2, Fout2)
    assert jnp.allclose(out2, ref2, atol=1e-4, rtol=1e-4), "tiled path mismatch"

    print("KERNEL_OK")
</pallas_src>

<mosaic_0001>
module attributes {stable_mosaic.version = 11 : i64} {
  func.func @_gcn_kernel(%arg0: i32, %arg1: i32, %arg2: memref<1x16x8xf32, #tpu.memory_space<vmem>>, %arg3: memref<1x16x16xf32, #tpu.memory_space<vmem>>, %arg4: memref<8x128xf32, #tpu.memory_space<vmem>>, %arg5: memref<1x16x128xf32, #tpu.memory_space<vmem>>, %arg6: memref<16x128xf32, #tpu.memory_space<vmem>>) attributes {dimension_semantics = [#tpu.dimension_semantics<parallel>, #tpu.dimension_semantics<arbitrary>], iteration_bounds = array<i64: 2, 1>, scalar_prefetch = 0 : i64, scratch_operands = 1 : i64, tpu.core_type = #tpu.core_type<tc>, window_params = [{transform_indices = @transform_0, window_bounds = array<i64: 1, 16, 8>}, {transform_indices = @transform_1, window_bounds = array<i64: 1, 16, 16>}, {pipeline_mode = #tpu.pipeline_mode<synchronous>, transform_indices = @transform_2, window_bounds = array<i64: 8, 128>}, {transform_indices = @transform_3, window_bounds = array<i64: 1, 16, 128>}]} {
    %c0_i32 = arith.constant 0 : i32
    %0 = arith.cmpi eq, %arg1, %c0_i32 : i32
    %1 = arith.extui %0 : i1 to i32
    %c0_i32_0 = arith.constant 0 : i32
    %2 = arith.cmpi ne, %1, %c0_i32_0 : i32
    scf.if %2 {
      %c0_8 = arith.constant 0 : index
      %c0_9 = arith.constant 0 : index
      %c0_10 = arith.constant 0 : index
      %10 = vector.load %arg2[%c0_8, %c0_9, %c0_10] : memref<1x16x8xf32, #tpu.memory_space<vmem>>, vector<1x16x8xf32>
      %11 = vector.shape_cast %10 : vector<1x16x8xf32> to vector<16x8xf32>
      %c0_11 = arith.constant 0 : index
      %c0_12 = arith.constant 0 : index
      %12 = vector.load %arg4[%c0_11, %c0_12] : memref<8x128xf32, #tpu.memory_space<vmem>>, vector<8x128xf32>
      %cst_13 = arith.constant dense<0.000000e+00> : vector<16x128xf32>
      %13 = tpu.matmul %11, %12, %cst_13 {dimension_numbers = #tpu.dot_dimension_numbers<[1], [0], [0], [1], [0, 0, 1, 1], [], []>} : vector<16x8xf32>, vector<8x128xf32>, vector<16x128xf32> -> vector<16x128xf32>
      %c0_14 = arith.constant 0 : index
      %c0_15 = arith.constant 0 : index
      %14 = vector.load %arg6[%c0_14, %c0_15] : memref<16x128xf32, #tpu.memory_space<vmem>>, vector<16x128xf32>
      tpu.vector_store %arg6[%c0_14, %c0_15], %13 {strides = array<i32>} : memref<16x128xf32, #tpu.memory_space<vmem>>, vector<16x128xf32>,
    } else {
    }
    %c0 = arith.constant 0 : index
    %c0_1 = arith.constant 0 : index
    %c0_2 = arith.constant 0 : index
    %3 = vector.load %arg3[%c0, %c0_1, %c0_2] : memref<1x16x16xf32, #tpu.memory_space<vmem>>, vector<1x16x16xf32>
    %4 = vector.shape_cast %3 : vector<1x16x16xf32> to vector<16x16xf32>
    %c0_3 = arith.constant 0 : index
    %c0_4 = arith.constant 0 : index
    %5 = vector.load %arg6[%c0_3, %c0_4] : memref<16x128xf32, #tpu.memory_space<vmem>>, vector<16x128xf32>
    %cst = arith.constant dense<0.000000e+00> : vector<16x128xf32>
    %6 = tpu.matmul %4, %5, %cst {dimension_numbers = #tpu.dot_dimension_numbers<[1], [0], [0], [1], [0, 0, 1, 1], [], []>} : vector<16x16xf32>, vector<16x128xf32>, vector<16x128xf32> -> vector<16x128xf32>
    %c0_5 = arith.constant 0 : index
    %c0_6 = arith.constant 0 : index
    %c0_7 = arith.constant 0 : index
    %7 = vector.load %arg5[%c0_5, %c0_6, %c0_7] : memref<1x16x128xf32, #tpu.memory_space<vmem>>, vector<1x16x128xf32>
    %8 = vector.shape_cast %7 : vector<1x16x128xf32> to vector<16x128xf32>
    %9 = vector.shape_cast %6 : vector<16x128xf32> to vector<1x16x128xf32>
    tpu.vector_store %arg5[%c0_5, %c0_6, %c0_7], %9 {strides = array<i32>} : memref<1x16x128xf32, #tpu.memory_space<vmem>>, vector<1x16x128xf32>,
    return
  }
  func.func @transform_0(%arg0: i32, %arg1: i32) -> (i32, i32, i32) {
    %c0_i32 = arith.constant 0 : i32
    %c0_i32_0 = arith.constant 0 : i32
    %c0_i32_1 = arith.constant 0 : i32
    return %arg0, %c0_i32, %c0_i32_0 : i32, i32, i32
  }
  func.func @transform_1(%arg0: i32, %arg1: i32) -> (i32, i32, i32) {
    %c0_i32 = arith.constant 0 : i32
    %c0_i32_0 = arith.constant 0 : i32
    return %arg0, %arg1, %c0_i32 : i32, i32, i32
  }
  func.func @transform_2(%arg0: i32, %arg1: i32) -> (i32, i32) {
    %c0_i32 = arith.constant 0 : i32
    %c0_i32_0 = arith.constant 0 : i32
    %c0_i32_1 = arith.constant 0 : i32
    return %c0_i32, %c0_i32_0 : i32, i32
  }
  func.func @transform_3(%arg0: i32, %arg1: i32) -> (i32, i32, i32) {
    %c0_i32 = arith.constant 0 : i32
    %c0_i32_0 = arith.constant 0 : i32
    return %arg0, %arg1, %c0_i32 : i32, i32, i32
  }
}

</mosaic_0001>

<bundles_post_ra>
// kernel: tpu_custom_call.1
= control target key start
LH: loop header
LB: loop body
LE: loop exit
PB: predicated region body
PF: predicated region fallthrough
CT: control target
= control target key end

     0   :  { %8 = vsyncpa [#allocation4], 0  ;;  %s691_s0 = inlined_call_operand.vmem [shape: f32[2,16,8], index: 0, kind: input, shape index: {}]   ;;  %s692_s1 = inlined_call_operand.vmem [shape: f32[2,16,16], index: 1, kind: input, shape index: {}]   ;;  %s693_s2 = inlined_call_operand.vmem [shape: f32[8,128], index: 2, kind: input, shape index: {}]   ;;  %s694_s3 = inlined_call_operand.hbm [shape: f32[2,16,128], index: 3, kind: output, shape index: {}]  }
   0x1   :  { %10 = vsyncpa [#allocation4 + $0x1], 0  ;;  %s588_s12 = smov 0   ;;  %s590_s13 = smov 0  }
   0x2   :  { %s592_s14 = smov 0   ;;  %s594_s15 = smov 0  }
   0x3   :  { %s596_s16 = smov 0   ;;  %s598_s17 = smov 0  }
   0x4 LB: > { %s404_s18 = sadd.s32 4294967295, %s564_s17   ;;  %s405_s19 = sadd.s32 4294967294, %s564_s17   ;;  %s564_s17 = sphi %s598_s17, %s16_s17   ;;  %s560_s16 = sphi %s596_s16, %s701_s16   ;;  %s556_s15 = sphi %s594_s15, %s700_s15   ;;  %s552_s14 = sphi %s592_s14, %s699_s14   ;;  %s548_s13 = sphi %s590_s13, %s698_s13   ;;  %s544_s12 = sphi %s588_s12, %s697_s12  }
   0x5   : > { %s28_s20 = sadd.s32 1, %s560_s16  ;;  %s112_s21 = sadd.s32 1, %s552_s14 }
   0x6   : > { %p30_p0 = scmp.ge.s32.totalorder %s28_s20, 2  ;;  %p122_p1 = scmp.ne.s32.totalorder %s552_s14, %s548_s13 }
   0x7   : > { %p123_p2 = scmp.eq.s32.totalorder %s404_s18, 1  ;;  %p128_p3 = scmp.ne.s32.totalorder %s548_s13, %s544_s12 }
   0x8   : > { %s703_s20 = smov (%p30_p0, %s28_s20), 0  ;;  %p129_p5 = scmp.eq.s32.totalorder %s405_s19, 1 }
   0x9   : > { %p628_p4 = por %p123_p2, %p122_p1  ;;  %s107_s23 = ssub.s32 %s560_s16, %s703_s20 }
   0xa   : > { %p408_p6 = scmp.ge.s32.totalorder %s564_s17, 1  ;;  %p110_p7 = scmp.eq.s32.totalorder %s107_s23, 0 }
   0xb   : > { %p635_p8 = por %p129_p5, %p128_p3  ;;  %p171_p9 = scmp.lt.s32.totalorder %s564_s17, 3 }
   0xc   : > { %s641_s25 = scalar_select %p110_p7, %s552_s14, %s112_s21  }
   0xd   : > { %p172_p10 = pnand %p408_p6, %p171_p9 }
   0xe   : > { %p204_p11 = scmp.lt.s32.totalorder (!%p172_p10), %s556_s15, 1  ;;  %s201_s9 = sand.u32 (!%p172_p10), 1, %s548_s13  }
   0xf   : > { %175 = sbr.rel (%p172_p10) target bundleno = 296 (0x128), region = 32  ;;  %s409_s10 = sshll.u32 (!%p172_p10), %s201_s9, 4 }
  0x10   : > { %s425_s11 = sshll.u32 (!%p172_p10), %s556_s15, 4  ;;  %s203_s23 = scalar_lea.vmem (!%p172_p10), [#allocation3], %s409_s10 }
  0x11   : > { %s309_s21 = scalar_lea.hbm (!%p172_p10), %s694_s3, %s425_s11  ;;  %s310_s26 = sshll.u32 (!%p172_p10), %s203_s23, 4  ;;  %s311_s26 = int_to_ptr.vmem [resolvable:$true] %s310_s26 }
  0x12   : > { %s312_s27 = sshll.u32 (!%p172_p10), %s309_s21, 4  ;;  %s313_s27 = int_to_ptr.hbm [resolvable:$true] %s312_s27 }
  0x14   : > { %v226_v0 = vld [vmem:[%s693_s2] sm:$0xff]  ;;  %s205_s28 = scalar_select %p204_p11, %s556_s15, 1  ;;  %vm227_vm0 = vcmask 64512   ;;  %vm263_vm1 = vcmask 130048  }
  0x15   : > { %426 = vmatpush.msra.mxu3 %v226_v0  ;;  %249 = vmatpush.msra.mxu0 %v226_v0 }
  0x16   : > { %s423_s29 = sshll.u32 %s205_s28, 4  ;;  %s296_s28 = scalar_lea.sflag [#allocation4], %s201_s9 }
  0x17   : > { %s208_s5 = scalar_lea.vmem %s691_s0, %s423_s29  ;;  %s217_s8 = scalar_lea.vmem %s692_s1, %s423_s29 }
  0x18   : > { %v225_v1 = vld [vmem:[%s208_s5 + $0x8] sm:$0xff]  ;;  %v224_v2 = vld [vmem:[%s208_s5] sm:$0xff]  ;;  %s500_s29 = sshra.s32 %s313_s27, 4  ;;  %s506_s5 = scalar_lea.hbm %s694_s3, 32  ;;  %s501_s29 = int_to_ptr.hbm [resolvable:$true] %s500_s29 }
  0x19   : > { %415 = vmatmul.msk.f32.vlgmr.msra.gmra.mxu3 %vm227_vm0, %v225_v1  ;;  %414 = vmatmul.msk.f32.vlgmr.msra.gmra.mxu0 %vm227_vm0, %v224_v2  ;;  %v260_v5 = vld [vmem:[%s217_s8 + $0x8] sm:$0xff]  ;;  %v259_v6 = vld [vmem:[%s217_s8] sm:$0xff]  ;;  %s502_s30 = scalar_lea.hbm %s501_s29, 16  ;;  %p507_p1 = scmp.lt.s32.totalorder %s501_s29, %s694_s3 }
  0x1a   : > { %p503_p12 = scmp.ne.s32.totalorder %s501_s29, %s502_s30  ;;  %p508_p2 = scmp.lt.s32.totalorder %s506_s5, %s502_s30 }
  0x1c   : > { %p504_p13 = pnand %p503_p12, %p628_p4  ;;  %p509_p3 = por %p508_p2, %p507_p1 }
  0x1e   : > { %p505_p0 = pneg %p504_p13 }
  0x20   : > { %p510_p5 = pnand %p509_p3, %p505_p0 }
  0x96   : > { %v251_v4 = vpop.f32.mrf.mxu0 }
  0x9c   : > { %v254_v3 = vpop.f32.mrf.mxu3 }
  0x9d   : > { %284 = vmatpush.msra.mxu1 %v254_v3  ;;  %427 = vmatpush.msra.mxu2 %v254_v3 }
  0x9f   : > { %285 = vmatpush.msra.mxu1 %v251_v4  ;;  %428 = vmatpush.msra.mxu2 %v251_v4 }
  0xa0   : > { %417 = vmatmul.msk.f32.vlgmr.msra.gmra.mxu2 %vm263_vm1, %v260_v5  ;;  %416 = vmatmul.msk.f32.vlgmr.msra.gmra.mxu1 %vm263_vm1, %v259_v6 }
 0x11d   : > { %v287_v7 = vpop.f32.mrf.mxu1 }
 0x11e   : > { %293 = vst [vmem:[%s203_s23] sm:$0xff] %v287_v7 }
 0x123   : > { %v290_v8 = vpop.f32.mrf.mxu2 }
 0x124   : > { %294 = vst [vmem:[%s203_s23 + $0x8] sm:$0xff] %v290_v8 }
 0x125   : > { %513 = shalt.err (!%p510_p5)
}
 0x126   : > { %s566_s8 = smov 128   ;;  %s567_s9 = smov 8  }
 0x127   : > { %429 = dma.vmem_to_hbm [thread:$0]  (%p628_p4), %s311_s26, 256, %s313_s27, %s296_s28, %s566_s8, %s566_s8, %s567_s9  }
 0x128 PF: > { %p435_p6 = scmp.ge.s32.totalorder %s564_s17, 2  ;;  %s327_s10 = sand.u32 1, %s544_s12  }
 0x129   : > { %s328_s11 = scalar_lea.sflag [#allocation4], %s327_s10 }
 0x12a   : > { %p432_p7 = pnand %p435_p6, %p635_p8 }
 0x12c   : > { %p433_p9 = pneg %p432_p7 }
 0x12e   : > { %539 = dma.done.wait (%p433_p9), %s328_s11, 256  }
 0x12f   : > { %541 = vsyncadd (%p433_p9), %s328_s11, 4294967040  ;;  %s16_s17 = sadd.s32 1, %s564_s17   ;;  %s697_s12 = smov %s548_s13 }
 0x130   : > { %p13_p10 = scmp.ge.s32.totalorder %s16_s17, 4   ;;  %s698_s13 = smov %s552_s14 }
 0x131   : > { %s699_s14 = smov %s641_s25  ;;  %s700_s15 = smov %s560_s16 }
 0x132   : > { %s701_s16 = smov %s703_s20  ;;  %15 = sbr.rel (!%p13_p10) target bundleno = 4 (0x4), region = 74 }
 0x137   :  { %334 = vsyncpa [#allocation4], 1 }
 0x138   :  { %336 = vsyncpa [#allocation4 + $0x1], 1 }

</bundles_post_ra>
